<compile_context>
chip_gen: v7x
topology: tpu7x:2x2x1
jax: 0.10.0
libtpu: 0.0.40
codegen_flags: <defaults>
</compile_context>

<pallas_src>
import functools

import jax
import jax.numpy as jnp
from jax.experimental import pallas as pl
from jax.experimental.pallas import tpu as pltpu


def _round_up(x, m):
    return ((x + m - 1) // m) * m


# ------------------------------------------------------------------ kernels

def _fused_matmul_kernel(x_ref, w_ref, scale_ref, shift_ref, o_ref, *, leaky):
    # o = leaky_relu_{0.2}( (x @ w) * scale + shift )   (leaky optional)
    y = jnp.dot(x_ref[...], w_ref[...], preferred_element_type=jnp.float32)
    y = y * scale_ref[...] + shift_ref[...]
    if leaky:
        y = jnp.maximum(y, 0.2 * y)          # single VPU max (vs compare+select)
    o_ref[...] = y.astype(o_ref.dtype)


def fused_matmul(x, w, scale, shift, *, leaky):
    """x: [M, K] f32, w: [K, N] f32, scale/shift: [1, N] f32 -> [M, N] f32.

    Tiled over M (parallel grid axis, double-buffered by BlockSpec pipelining),
    N zero-padded to a multiple of 128 for lane-dense output stores, operands
    cast to bf16 for the MXU with f32 accumulation.
    """
    M, K = x.shape
    _, N = w.shape
    Npad = _round_up(N, 128)
    TM = 256 if M >= 256 else _round_up(M, 8)
    Mpad = _round_up(M, TM)

    x_p = jnp.pad(x, ((0, Mpad - M), (0, 0))).astype(jnp.bfloat16)
    w_p = jnp.pad(w, ((0, 0), (0, Npad - N))).astype(jnp.bfloat16)
    scale_p = jnp.pad(scale, ((0, 0), (0, Npad - N)))
    shift_p = jnp.pad(shift, ((0, 0), (0, Npad - N)))

    grid_m = Mpad // TM
    kernel = functools.partial(_fused_matmul_kernel, leaky=leaky)
    cost = pl.CostEstimate(
        flops=2 * Mpad * K * Npad,
        transcendentals=0,
        bytes_accessed=(Mpad * K + K * Npad) * 2 + 2 * Npad * 4 + Mpad * Npad * 4,
    )

    out = pl.pallas_call(
        kernel,
        out_shape=jax.ShapeDtypeStruct((Mpad, Npad), jnp.float32),
        grid=(grid_m,),
        in_specs=[
            pl.BlockSpec((TM, K), lambda i: (i, 0)),       # patches tile over M
            pl.BlockSpec((K, Npad), lambda i: (0, 0)),     # weights resident
            pl.BlockSpec((1, Npad), lambda i: (0, 0)),     # per-channel scale
            pl.BlockSpec((1, Npad), lambda i: (0, 0)),     # per-channel shift
        ],
        out_specs=pl.BlockSpec((TM, Npad), lambda i: (i, 0)),
        compiler_params=pltpu.CompilerParams(
            dimension_semantics=("parallel",),
        ),
        cost_estimate=cost,
    )(x_p, w_p, scale_p, shift_p)
    return out[:M, :N]


def _head_kernel(x_ref, w1_ref, b1_ref, w2_ref, b2_ref, o_ref):
    # Fused: global average pool + fc1 + LeakyReLU + (Dropout = identity) + fc2.
    pooled = jnp.mean(x_ref[...], axis=1)                         # [B, C] f32
    h = jnp.dot(pooled.astype(jnp.bfloat16), w1_ref[...],
                preferred_element_type=jnp.float32) + b1_ref[...]  # [B, 256]
    h = jnp.maximum(h, 0.2 * h)
    y = jnp.dot(h.astype(jnp.bfloat16), w2_ref[...],
                preferred_element_type=jnp.float32) + b2_ref[...]  # [B, 1]
    o_ref[...] = y.astype(o_ref.dtype)


def classifier_head(x, fc1, fc2):
    """x: [B, S, C] f32 (flattened spatial), fc1=(w1[256,C],b1[256]), fc2=(w2[1,256],b2[1])."""
    B, S, C = x.shape
    w1, b1 = fc1
    w2, b2 = fc2
    H1 = w1.shape[0]
    w1_t = w1.T.astype(jnp.bfloat16)                 # [C, 256]
    w2_t = w2.T.astype(jnp.bfloat16)                 # [256, 1]
    b1_r = b1.reshape(1, H1)
    b2_r = b2.reshape(1, 1)
    cost = pl.CostEstimate(
        flops=B * S * C + 2 * B * C * H1 + 2 * B * H1,
        transcendentals=0,
        bytes_accessed=B * S * C * 4 + (C * H1 + H1) * 2 + (H1 + 1) * 4 + B * 4,
    )
    return pl.pallas_call(
        _head_kernel,
        out_shape=jax.ShapeDtypeStruct((B, 1), jnp.float32),
        grid=(1,),
        in_specs=[
            pl.BlockSpec((B, S, C), lambda i: (0, 0, 0)),
            pl.BlockSpec((C, H1), lambda i: (0, 0)),
            pl.BlockSpec((1, H1), lambda i: (0, 0)),
            pl.BlockSpec((H1, 1), lambda i: (0, 0)),
            pl.BlockSpec((1, 1), lambda i: (0, 0)),
        ],
        out_specs=pl.BlockSpec((B, 1), lambda i: (0, 0)),
        cost_estimate=cost,
    )(x, w1_t, b1_r, w2_t, b2_r)


# --------------------------------------------------------------------- glue

def im2col_nhwc(x, kH, kW, sH, sW):
    """x: [B, H, W, C] NHWC -> patches [B*Hout*Wout, kH*kW*C] (PyTorch padding=k//2).

    K ordering is (tap, cin), matching w.transpose(2,3,1,0).reshape(kH*kW*Cin, Cout).
    """
    # TODO(synk): for large F/T, avoid materializing the kH*kW-duplicated patch
    # tensor in HBM by accumulating taps inside the matmul kernel instead.
    padH, padW = kH // 2, kW // 2
    x = jnp.pad(x, ((0, 0), (padH, padH), (padW, padW), (0, 0)))
    B, Hp, Wp, C = x.shape
    Hout = (Hp - kH) // sH + 1
    Wout = (Wp - kW) // sW + 1
    cols = []
    for i in range(kH):
        for j in range(kW):
            cols.append(x[:, i:i + sH * (Hout - 1) + 1:sH,
                             j:j + sW * (Wout - 1) + 1:sW, :])
    p = jnp.stack(cols, axis=3)                       # [B, Hout, Wout, kH*kW, C]
    p = p.reshape(B * Hout * Wout, kH * kW * C)
    return p, Hout, Wout


def init_params(key, config):
    """Deterministic init matching _init_weights: conv/linear ~ N(0,0.02), bias=0,
    BN weight ~ N(1,0.02), BN bias=0."""
    channels = config['channels']
    ksizes = config['kernel_sizes']
    params = {'convs': []}
    in_ch = 1
    for i, (out_ch, (kH, kW)) in enumerate(zip(channels, ksizes)):
        key, kw = jax.random.split(key)
        layer = {
            'w': 0.02 * jax.random.normal(kw, (out_ch, in_ch, kH, kW), jnp.float32),
            'b': jnp.zeros((out_ch,), jnp.float32),
        }
        if i > 0:
            key, kg = jax.random.split(key)
            layer['bn_gamma'] = 1.0 + 0.02 * jax.random.normal(kg, (out_ch,), jnp.float32)
            layer['bn_beta'] = jnp.zeros((out_ch,), jnp.float32)
        params['convs'].append(layer)
        in_ch = out_ch
    key, k1, k2 = jax.random.split(key, 3)
    params['fc1'] = (0.02 * jax.random.normal(k1, (256, channels[-1]), jnp.float32),
                     jnp.zeros((256,), jnp.float32))
    params['fc2'] = (0.02 * jax.random.normal(k2, (1, 256), jnp.float32),
                     jnp.zeros((1,), jnp.float32))
    return params


def forward(params, x, config):
    """x: [B, 1, F, T] (NCHW, matching the PyTorch module) -> logits [B, 1]."""
    B = x.shape[0]
    eps = 1e-5
    x = x.transpose(0, 2, 3, 1)                       # NCHW -> NHWC, once
    for li, layer in enumerate(params['convs']):
        w, b = layer['w'], layer['b']
        Cout, Cin, kH, kW = w.shape
        sH, sW = config['strides'][li]
        patches, Hout, Wout = im2col_nhwc(x, kH, kW, sH, sW)
        w_mat = w.transpose(2, 3, 1, 0).reshape(kH * kW * Cin, Cout)
        if 'bn_gamma' in layer:
            # TODO(synk): eval-mode BatchNorm (running stats 0/1) folded into
            # per-channel scale/shift; training-mode batch statistics not modeled.
            scale = layer['bn_gamma'] / jnp.sqrt(1.0 + eps)
            shift = b * scale + layer['bn_beta']
        else:
            scale = jnp.ones((Cout,), jnp.float32)
            shift = b
        y = fused_matmul(patches, w_mat,
                         scale.reshape(1, Cout), shift.reshape(1, Cout),
                         leaky=True)
        x = y.reshape(B, Hout, Wout, Cout)            # stay NHWC

    # AdaptiveAvgPool2d(1) + Flatten + Linear(C,256) + LeakyReLU + Dropout(eval) +
    # Linear(256,1) fused in one Pallas kernel.
    Bc, H, W, C = x.shape
    logits = classifier_head(x.reshape(Bc, H * W, C), params['fc1'], params['fc2'])
    return logits


if __name__ == "__main__":
    config = {
        'channels': [8, 16, 32],
        'kernel_sizes': [(3, 3), (3, 3), (3, 3)],
        'strides': [(1, 1), (2, 2), (2, 2)],
    }
    key = jax.random.PRNGKey(0)
    key, kx, kp = jax.random.split(key, 3)
    x = jax.random.normal(kx, (2, 1, 16, 16), jnp.float32)   # [B, 1, F, T]
    params = init_params(kp, config)

    logits = forward(params, x, config)
    jax.block_until_ready(logits)
    assert logits.shape == (2, 1), logits.shape
    print("KERNEL_OK")
</pallas_src>

<mosaic_0001>
module attributes {stable_mosaic.version = 11 : i64} {
  func.func @_fused_matmul_kernel(%arg0: i32, %arg1: memref<256x9xbf16, #tpu.memory_space<vmem>>, %arg2: memref<9x128xbf16, #tpu.memory_space<vmem>>, %arg3: memref<1x128xf32, #tpu.memory_space<vmem>>, %arg4: memref<1x128xf32, #tpu.memory_space<vmem>>, %arg5: memref<256x128xf32, #tpu.memory_space<vmem>>) attributes {dimension_semantics = [#tpu.dimension_semantics<parallel>], iteration_bounds = array<i64: 2>, scalar_prefetch = 0 : i64, scratch_operands = 0 : i64, tpu.core_type = #tpu.core_type<tc>, window_params = [{transform_indices = @transform_0, window_bounds = array<i64: 256, 9>}, {pipeline_mode = #tpu.pipeline_mode<synchronous>, transform_indices = @transform_1, window_bounds = array<i64: 9, 128>}, {pipeline_mode = #tpu.pipeline_mode<synchronous>, transform_indices = @transform_2, window_bounds = array<i64: 1, 128>}, {pipeline_mode = #tpu.pipeline_mode<synchronous>, transform_indices = @transform_3, window_bounds = array<i64: 1, 128>}, {transform_indices = @transform_4, window_bounds = array<i64: 256, 128>}]} {
    %c0 = arith.constant 0 : index
    %c0_0 = arith.constant 0 : index
    %0 = vector.load %arg1[%c0, %c0_0] : memref<256x9xbf16, #tpu.memory_space<vmem>>, vector<256x9xbf16>
    %c0_1 = arith.constant 0 : index
    %c0_2 = arith.constant 0 : index
    %1 = vector.load %arg2[%c0_1, %c0_2] : memref<9x128xbf16, #tpu.memory_space<vmem>>, vector<9x128xbf16>
    %cst = arith.constant dense<0.000000e+00> : vector<256x128xf32>
    %2 = tpu.matmul %0, %1, %cst {dimension_numbers = #tpu.dot_dimension_numbers<[1], [0], [0], [1], [0, 0, 1, 1], [], []>} : vector<256x9xbf16>, vector<9x128xbf16>, vector<256x128xf32> -> vector<256x128xf32>
    %c0_3 = arith.constant 0 : index
    %c0_4 = arith.constant 0 : index
    %3 = vector.load %arg3[%c0_3, %c0_4] : memref<1x128xf32, #tpu.memory_space<vmem>>, vector<1x128xf32>
    %4 = vector.broadcast %3 : vector<1x128xf32> to vector<256x128xf32>
    %5 = arith.mulf %2, %4 : vector<256x128xf32>
    %c0_5 = arith.constant 0 : index
    %c0_6 = arith.constant 0 : index
    %6 = vector.load %arg4[%c0_5, %c0_6] : memref<1x128xf32, #tpu.memory_space<vmem>>, vector<1x128xf32>
    %7 = vector.broadcast %6 : vector<1x128xf32> to vector<256x128xf32>
    %8 = arith.addf %5, %7 : vector<256x128xf32>
    %cst_7 = arith.constant 2.000000e-01 : f32
    %9 = vector.broadcast %cst_7 : f32 to vector<256x128xf32>
    %10 = arith.mulf %9, %8 : vector<256x128xf32>
    %11 = arith.maximumf %8, %10 : vector<256x128xf32>
    %c0_8 = arith.constant 0 : index
    %c0_9 = arith.constant 0 : index
    %12 = vector.load %arg5[%c0_8, %c0_9] : memref<256x128xf32, #tpu.memory_space<vmem>>, vector<256x128xf32>
    tpu.vector_store %arg5[%c0_8, %c0_9], %11 {strides = array<i32>} : memref<256x128xf32, #tpu.memory_space<vmem>>, vector<256x128xf32>,
    return
  }
  func.func @transform_0(%arg0: i32) -> (i32, i32) {
    %c0_i32 = arith.constant 0 : i32
    %c0_i32_0 = arith.constant 0 : i32
    return %arg0, %c0_i32 : i32, i32
  }
  func.func @transform_1(%arg0: i32) -> (i32, i32) {
    %c0_i32 = arith.constant 0 : i32
    %c0_i32_0 = arith.constant 0 : i32
    %c0_i32_1 = arith.constant 0 : i32
    return %c0_i32, %c0_i32_0 : i32, i32
  }
  func.func @transform_2(%arg0: i32) -> (i32, i32) {
    %c0_i32 = arith.constant 0 : i32
    %c0_i32_0 = arith.constant 0 : i32
    %c0_i32_1 = arith.constant 0 : i32
    return %c0_i32, %c0_i32_0 : i32, i32
  }
  func.func @transform_3(%arg0: i32) -> (i32, i32) {
    %c0_i32 = arith.constant 0 : i32
    %c0_i32_0 = arith.constant 0 : i32
    %c0_i32_1 = arith.constant 0 : i32
    return %c0_i32, %c0_i32_0 : i32, i32
  }
  func.func @transform_4(%arg0: i32) -> (i32, i32) {
    %c0_i32 = arith.constant 0 : i32
    %c0_i32_0 = arith.constant 0 : i32
    return %arg0, %c0_i32 : i32, i32
  }
}

</mosaic_0001>

<bundles_post_ra>
// kernel: tpu_custom_call.1
= control target key start
LH: loop header
LB: loop body
LE: loop exit
PB: predicated region body
PF: predicated region fallthrough
CT: control target
= control target key end

     0   :  { %9 = vsyncpa [#allocation3], 0  ;;  %s1291_s0 = inlined_call_operand.vmem [shape: bf16[512,9], index: 0, kind: input, shape index: {}]   ;;  %s1292_s1 = inlined_call_operand.vmem [shape: bf16[9,128], index: 1, kind: input, shape index: {}]   ;;  %s1293_s2 = inlined_call_operand.vmem [shape: f32[1,128], index: 2, kind: input, shape index: {}]   ;;  %s1294_s3 = inlined_call_operand.vmem [shape: f32[1,128], index: 3, kind: input, shape index: {}]   ;;  %s1295_s4 = inlined_call_operand.hbm [shape: f32[512,128], index: 4, kind: output, shape index: {}]  }
   0x1   :  { %11 = vsyncpa [#allocation3 + $0x1], 0  ;;  %s1039_s15 = smov 0   ;;  %s1041_s16 = smov 0  }
   0x2   :  { %s1043_s17 = smov 0   ;;  %s1045_s18 = smov 0  }
   0x3 LB: > { %s1060_s19 = sadd.s32 4294967295, %s1008_s18   ;;  %s786_s20 = sadd.s32 4294967294, %s1008_s18   ;;  %s1008_s18 = sphi %s1045_s18, %s1301_s18   ;;  %s1004_s17 = sphi %s1043_s17, %s1300_s17   ;;  %s1000_s16 = sphi %s1041_s16, %s1299_s16   ;;  %s996_s15 = sphi %s1039_s15, %s1298_s15  }
   0x4   : > { %s1064_s21 = sadd.s32 1, %s1008_s18   ;;  %s113_s22 = sadd.s32 1, %s1004_s17 }
   0x5   : > { %s110_s23 = ssub.s32 %s1008_s18, %s1064_s21  ;;  %p123_p0 = scmp.ne.s32.totalorder %s1004_s17, %s1000_s16 }
   0x6   : > { %p111_p1 = scmp.eq.s32.totalorder %s110_s23, 0  ;;  %p124_p2 = scmp.eq.s32.totalorder %s1060_s19, 1 }
   0x7   : > { %p129_p3 = scmp.ne.s32.totalorder %s1000_s16, %s996_s15  ;;  %p130_p4 = scmp.eq.s32.totalorder %s786_s20, 1 }
   0x8   : > { %s1075_s24 = scalar_select %p111_p1, %s1004_s17, %s113_s22  }
   0x9   : > { %p1077_p5 = por %p124_p2, %p123_p0  ;;  %p1081_p6 = por %p130_p4, %p129_p3 }
   0xa   : > { %p789_p7 = scmp.ge.s32.totalorder %s1008_s18, 1  ;;  %p166_p8 = scmp.lt.s32.totalorder %s1008_s18, 3 }
   0xc   : > { %p167_p9 = pnand %p789_p7, %p166_p8 }
   0xd   : > { %v929_v0 = vld [vmem:[%s1292_s1] sm:$0x1f] (!%p167_p9)   ;;  %vm368_vm0 = vcmask (!%p167_p9), 1043456   ;;  %vm369_vm1 = vcmask (!%p167_p9), 1044480   ;;  %s791_s29 = sshll.u32 (!%p167_p9), %s1060_s19, 5  ;;  %v1010_v1 = vmov (!%p167_p9), 65535  }
   0xe   : > { %170 = sbr.rel (%p167_p9) target bundleno = 291 (0x123), region = 36  ;;  %v370_v2 = vsel (!%p167_p9), %vm368_vm0, 4294967295, %v1010_v1  ;;  %p193_p10 = scmp.lt.s32.totalorder (!%p167_p9), %s791_s29, 63  ;;  %vm319_vm2 = vcmask (!%p167_p9), 72704   ;;  %v1131_v21 = vld [vmem:[%s1293_s2] ss:$0 sm:$0xff] (!%p167_p9) }
   0xf   : > { %v371_v3 = vsel (!%p167_p9), %vm369_vm1, %v370_v2, 0  ;;  %s189_s10 = sand.u32 (!%p167_p9), 1, %s1000_s16   ;;  %v1137_v23 = vld [vmem:[%s1294_s3] ss:$0 sm:$0xff] (!%p167_p9)  ;;  %s833_s20 = sshll.u32 (!%p167_p9), %s1060_s19, 12 }
  0x10   : > { %v373_v4 = vand.u32 (!%p167_p9), %v929_v0, %v371_v3  ;;  %s790_s13 = sshll.u32 (!%p167_p9), %s189_s10, 8  ;;  %s1239_s27 = scalar_lea.hbm (!%p167_p9), %s1295_s4, %s833_s20 }
  0x11   : > { %s1157_s14 = scalar_lea.vmem (!%p167_p9), [#allocation2], %s790_s13  ;;  %s1250_s28 = scalar_lea.sflag (!%p167_p9), [#allocation3], %s189_s10 }
  0x12   : > { %851 = vmatprep.subr.bf16.mxu0 (!%p167_p9), %v373_v4  ;;  %885 = vmatprep.subr.bf16.mxu1 (!%p167_p9), %v373_v4  ;;  %s724_s22 = sshll.u32 (!%p167_p9), %s1157_s14, 4  ;;  %s1241_s22 = int_to_ptr.vmem [resolvable:$true] %s724_s22 }
  0x13   : > { %852 = vmatpush3.bf16.msra.mxu0 (!%p167_p9), %v373_v4  ;;  %886 = vmatpush3.bf16.msra.mxu1 (!%p167_p9), %v373_v4 }
  0x15   : > { %s1303_s29 = smov (!%p193_p10, %s791_s29), 63 }
  0x16   : > { %s792_s30 = sshll.u32 %s1303_s29, 2  ;;  %s946_s29 = scalar_lea.vmem %s1241_s22, 4096 }
  0x17   : > { %s1094_s7 = scalar_lea.vmem %s1291_s0, %s792_s30  ;;  %p947_p11 = scmp.ne.s32.totalorder %s1241_s22, %s946_s29 }
  0x18   : > { %v930_v5 = vld [vmem:[%s1094_s7] sm:$0xff]   ;;  %v932_v7 = vld [vmem:[%s1094_s7 + $0x8] sm:$0xff]   ;;  %v934_v9 = vld [vmem:[%s1094_s7 + $0x10] sm:$0xff]   ;;  %s1011_s30 = smov [#allocation2]  }
  0x19   : > { %v931_v6 = vld [vmem:[%s1094_s7 + $0x40] sm:$0xff]   ;;  %853 = vmatprep.mubr.msk.bf16.mxu0 %vm319_vm2, %v930_v5  ;;  %v933_v8 = vld [vmem:[%s1094_s7 + $0x48] sm:$0xff]   ;;  %v935_v10 = vld [vmem:[%s1094_s7 + $0x50] sm:$0xff]   ;;  %p948_p12 = pnand %p947_p11, %p1077_p5  ;;  %s950_s5 = sshll.u32 %s1011_s30, 4  ;;  %s951_s5 = int_to_ptr.vmem [resolvable:$false] %s950_s5 }
  0x1a   : > { %869 = vmatprep.mubr.msk.bf16.mxu1 %vm319_vm2, %v931_v6  ;;  %854 = vmatmul.mubr.msk.bf16.vlgmr.msra.gmra.mrb[0].mxu0 %vm319_vm2, %v932_v7  ;;  %v936_v11 = vld [vmem:[%s1094_s7 + $0x18] sm:$0xff]   ;;  %v938_v13 = vld [vmem:[%s1094_s7 + $0x20] sm:$0xff]   ;;  %v940_v15 = vld [vmem:[%s1094_s7 + $0x28] sm:$0xff]   ;;  %s952_s6 = scalar_lea.vmem %s951_s5, 8192  ;;  %p953_p0 = scmp.lt.s32.totalorder %s1241_s22, %s951_s5 }
  0x1b   : > { %870 = vmatmul.mubr.msk.bf16.vlgmr.msra.gmra.mrb[0].mxu1 %vm319_vm2, %v933_v8  ;;  %857 = vmatprep.mubr.msk.bf16.mxu0 %vm319_vm2, %v934_v9  ;;  %v937_v12 = vld [vmem:[%s1094_s7 + $0x58] sm:$0xff]   ;;  %v939_v14 = vld [vmem:[%s1094_s7 + $0x60] sm:$0xff]   ;;  %v941_v16 = vld [vmem:[%s1094_s7 + $0x68] sm:$0xff]   ;;  %p949_p13 = pneg %p948_p12  ;;  %p954_p1 = scmp.lt.s32.totalorder %s952_s6, %s946_s29 }
  0x1c   : > { %873 = vmatprep.mubr.msk.bf16.mxu1 %vm319_vm2, %v935_v10  ;;  %v942_v17 = vld [vmem:[%s1094_s7 + $0x30] sm:$0xff]   ;;  %v944_v19 = vld [vmem:[%s1094_s7 + $0x38] sm:$0xff]  }
  0x1d   : > { %v943_v18 = vld [vmem:[%s1094_s7 + $0x70] sm:$0xff]   ;;  %v945_v20 = vld [vmem:[%s1094_s7 + $0x78] sm:$0xff]   ;;  %p955_p2 = por %p954_p1, %p953_p0 }
  0x1f   : > { %p956_p3 = pnand %p955_p2, %p949_p13 }
  0x22   : > { %858 = vmatmul.mubr.msk.bf16.gmra.mrb[4].mxu0 %vm319_vm2, %v936_v11 }
  0x23   : > { %874 = vmatmul.mubr.msk.bf16.gmra.mrb[4].mxu1 %vm319_vm2, %v937_v12  ;;  %861 = vmatprep.mubr.msk.bf16.mxu0 %vm319_vm2, %v938_v13 }
  0x24   : > { %877 = vmatprep.mubr.msk.bf16.mxu1 %vm319_vm2, %v939_v14 }
  0x2a   : > { %862 = vmatmul.mubr.msk.bf16.gmra.mrb[8].mxu0 %vm319_vm2, %v940_v15 }
  0x2b   : > { %878 = vmatmul.mubr.msk.bf16.gmra.mrb[8].mxu1 %vm319_vm2, %v941_v16  ;;  %865 = vmatprep.mubr.msk.bf16.mxu0 %vm319_vm2, %v942_v17 }
  0x2c   : > { %881 = vmatprep.mubr.msk.bf16.mxu1 %vm319_vm2, %v943_v18 }
  0x32   : > { %866 = vmatmul.mubr.msk.bf16.gmra.mrb[12].mxu0 %vm319_vm2, %v944_v19 }
  0x33   : > { %882 = vmatmul.mubr.msk.bf16.gmra.mrb[12].mxu1 %vm319_vm2, %v945_v20 }
  0xed   : > { %v855_v22 = vpop.f32.mrb[0].mxu0 }
  0xee   : > { %v545_v24 = vmul.f32 %v855_v22, %v1131_v21  ;;  %v871_v25 = vpop.f32.mrb[0].mxu1  ;;  %v409_v26 = vpop.f32.mrb[1].mxu0 }
  0xef   : > { %v561_v27 = vmul.f32 %v871_v25, %v1131_v21  ;;  %v543_v28 = vmul.f32 %v1131_v21, %v409_v26  ;;  %v473_v29 = vpop.f32.mrb[1].mxu1  ;;  %v856_v30 = vpop.f32.mrb[2].mxu0 }
  0xf0   : > { %v584_v31 = vadd.f32 %v1137_v23, %v545_v24  ;;  %v559_v32 = vmul.f32 %v1131_v21, %v473_v29  ;;  %v546_v33 = vmul.f32 %v856_v30, %v1131_v21  ;;  %v872_v34 = vpop.f32.mrb[2].mxu1  ;;  %v412_v35 = vpop.f32.mrb[3].mxu0 }
  0xf1   : > { %v600_v36 = vadd.f32 %v1137_v23, %v561_v27  ;;  %v582_v37 = vadd.f32 %v1137_v23, %v543_v28  ;;  %v562_v38 = vmul.f32 %v872_v34, %v1131_v21  ;;  %v544_v39 = vmul.f32 %v1131_v21, %v412_v35  ;;  %v476_v40 = vpop.f32.mrb[3].mxu1 }
  0xf2   : > { %v616_v41 = vmul.f32 0.2, %v584_v31  ;;  %v598_v42 = vadd.f32 %v1137_v23, %v559_v32  ;;  %v585_v43 = vadd.f32 %v1137_v23, %v546_v33  ;;  %v560_v44 = vmul.f32 %v1131_v21, %v476_v40 }
  0xf3   : > { %v632_v45 = vmul.f32 0.2, %v600_v36  ;;  %v614_v46 = vmul.f32 0.2, %v582_v37  ;;  %v601_v47 = vadd.f32 %v1137_v23, %v562_v38  ;;  %v583_v48 = vadd.f32 %v1137_v23, %v544_v39 }
  0xf4   : > { %v648_v49 = vmax.f32 %v584_v31, %v616_v41  ;;  %v630_v50 = vmul.f32 0.2, %v598_v42  ;;  %v617_v51 = vmul.f32 0.2, %v585_v43  ;;  %v599_v52 = vadd.f32 %v1137_v23, %v560_v44 }
  0xf5   : > { %v664_v53 = vmax.f32 %v600_v36, %v632_v45  ;;  %v646_v54 = vmax.f32 %v582_v37, %v614_v46  ;;  %v633_v55 = vmul.f32 0.2, %v601_v47  ;;  %v615_v56 = vmul.f32 0.2, %v583_v48  ;;  %v859_v57 = vpop.f32.mrb[4].mxu0 }
  0xf6   : > { %680 = vst [vmem:[%s1157_s14 + $0x10] sm:$0xff] %v648_v49  ;;  %v662_v58 = vmax.f32 %v598_v42, %v630_v50  ;;  %v649_v59 = vmax.f32 %v585_v43, %v617_v51  ;;  %v631_v60 = vmul.f32 0.2, %v599_v52  ;;  %v549_v61 = vmul.f32 %v859_v57, %v1131_v21  ;;  %v875_v62 = vpop.f32.mrb[4].mxu1  ;;  %v425_v63 = vpop.f32.mrb[5].mxu0 }
  0xf7   : > { %696 = vst [vmem:[%s1157_s14 + $0x90] sm:$0xff] %v664_v53  ;;  %678 = vst [vmem:[%s1157_s14] sm:$0xff] %v646_v54  ;;  %v665_v0 = vmax.f32 %v601_v47, %v633_v55  ;;  %v647_v1 = vmax.f32 %v583_v48, %v615_v56  ;;  %v565_v2 = vmul.f32 %v875_v62, %v1131_v21  ;;  %v489_v4 = vpop.f32.mrb[5].mxu1  ;;  %v860_v5 = vpop.f32.mrb[6].mxu0 }
  0xf8   : > { %v547_v3 = vmul.f32 %v1131_v21, %v425_v63  ;;  %694 = vst [vmem:[%s1157_s14 + $0x80] sm:$0xff] %v662_v58  ;;  %681 = vst [vmem:[%s1157_s14 + $0x18] sm:$0xff] %v649_v59  ;;  %v663_v6 = vmax.f32 %v599_v52, %v631_v60  ;;  %v588_v7 = vadd.f32 %v1137_v23, %v549_v61  ;;  %v876_v10 = vpop.f32.mrb[6].mxu1  ;;  %v428_v11 = vpop.f32.mrb[7].mxu0 }
  0xf9   : > { %v563_v8 = vmul.f32 %v1131_v21, %v489_v4  ;;  %v550_v9 = vmul.f32 %v860_v5, %v1131_v21  ;;  %697 = vst [vmem:[%s1157_s14 + $0x98] sm:$0xff] %v665_v0  ;;  %679 = vst [vmem:[%s1157_s14 + $0x8] sm:$0xff] %v647_v1  ;;  %v604_v12 = vadd.f32 %v1137_v23, %v565_v2  ;;  %v492_v16 = vpop.f32.mrb[7].mxu1 }
  0xfa   : > { %v586_v13 = vadd.f32 %v1137_v23, %v547_v3  ;;  %v566_v14 = vmul.f32 %v876_v10, %v1131_v21  ;;  %v548_v15 = vmul.f32 %v1131_v21, %v428_v11  ;;  %695 = vst [vmem:[%s1157_s14 + $0x88] sm:$0xff] %v663_v6  ;;  %v620_v17 = vmul.f32 0.2, %v588_v7 }
  0xfb   : > { %v602_v18 = vadd.f32 %v1137_v23, %v563_v8  ;;  %v589_v19 = vadd.f32 %v1137_v23, %v550_v9  ;;  %v564_v20 = vmul.f32 %v1131_v21, %v492_v16  ;;  %v636_v22 = vmul.f32 0.2, %v604_v12 }
  0xfc   : > { %v618_v24 = vmul.f32 0.2, %v586_v13  ;;  %v605_v25 = vadd.f32 %v1137_v23, %v566_v14  ;;  %v587_v26 = vadd.f32 %v1137_v23, %v548_v15  ;;  %v652_v27 = vmax.f32 %v588_v7, %v620_v17 }
  0xfd   : > { %v634_v28 = vmul.f32 0.2, %v602_v18  ;;  %v621_v29 = vmul.f32 0.2, %v589_v19  ;;  %v603_v30 = vadd.f32 %v1137_v23, %v564_v20  ;;  %v668_v31 = vmax.f32 %v604_v12, %v636_v22  ;;  %v863_v35 = vpop.f32.mrb[8].mxu0 }
  0xfe   : > { %v650_v32 = vmax.f32 %v586_v13, %v618_v24  ;;  %v637_v33 = vmul.f32 0.2, %v605_v25  ;;  %v619_v34 = vmul.f32 0.2, %v587_v26  ;;  %684 = vst [vmem:[%s1157_s14 + $0x30] sm:$0xff] %v652_v27  ;;  %v553_v39 = vmul.f32 %v863_v35, %v1131_v21  ;;  %v879_v40 = vpop.f32.mrb[8].mxu1 }
  0xff   : > { %v666_v36 = vmax.f32 %v602_v18, %v634_v28  ;;  %v653_v37 = vmax.f32 %v589_v19, %v621_v29  ;;  %v635_v38 = vmul.f32 0.2, %v603_v30  ;;  %v441_v41 = vpop.f32.mrb[9].mxu0  ;;  %700 = vst [vmem:[%s1157_s14 + $0xb0] sm:$0xff] %v668_v31  ;;  %v569_v44 = vmul.f32 %v879_v40, %v1131_v21  ;;  %v505_v46 = vpop.f32.mrb[9].mxu1 }
 0x100   : > { %682 = vst [vmem:[%s1157_s14 + $0x20] sm:$0xff] %v650_v32  ;;  %v669_v42 = vmax.f32 %v605_v25, %v637_v33  ;;  %v651_v43 = vmax.f32 %v587_v26, %v619_v34  ;;  %v551_v45 = vmul.f32 %v1131_v21, %v441_v41  ;;  %v864_v47 = vpop.f32.mrb[10].mxu0  ;;  %v592_v49 = vadd.f32 %v1137_v23, %v553_v39  ;;  %v880_v52 = vpop.f32.mrb[10].mxu1 }
 0x101   : > { %698 = vst [vmem:[%s1157_s14 + $0xa0] sm:$0xff] %v666_v36  ;;  %685 = vst [vmem:[%s1157_s14 + $0x38] sm:$0xff] %v653_v37  ;;  %v667_v48 = vmax.f32 %v603_v30, %v635_v38  ;;  %v567_v50 = vmul.f32 %v1131_v21, %v505_v46  ;;  %v554_v51 = vmul.f32 %v864_v47, %v1131_v21  ;;  %v444_v53 = vpop.f32.mrb[11].mxu0  ;;  %v508_v58 = vpop.f32.mrb[11].mxu1 }
 0x102   : > { %701 = vst [vmem:[%s1157_s14 + $0xb8] sm:$0xff] %v669_v42  ;;  %683 = vst [vmem:[%s1157_s14 + $0x28] sm:$0xff] %v651_v43  ;;  %v608_v54 = vadd.f32 %v1137_v23, %v569_v44  ;;  %v590_v55 = vadd.f32 %v1137_v23, %v551_v45  ;;  %v570_v56 = vmul.f32 %v880_v52, %v1131_v21  ;;  %v624_v59 = vmul.f32 0.2, %v592_v49 }
 0x103   : > { %v552_v57 = vmul.f32 %v1131_v21, %v444_v53  ;;  %699 = vst [vmem:[%s1157_s14 + $0xa8] sm:$0xff] %v667_v48  ;;  %v606_v60 = vadd.f32 %v1137_v23, %v567_v50  ;;  %v593_v61 = vadd.f32 %v1137_v23, %v554_v51  ;;  %v568_v62 = vmul.f32 %v1131_v21, %v508_v58 }
 0x104   : > { %v640_v63 = vmul.f32 0.2, %v608_v54  ;;  %v622_v0 = vmul.f32 0.2, %v590_v55  ;;  %v609_v1 = vadd.f32 %v1137_v23, %v570_v56  ;;  %v656_v3 = vmax.f32 %v592_v49, %v624_v59 }
 0x105   : > { %v591_v2 = vadd.f32 %v1137_v23, %v552_v57  ;;  %v638_v4 = vmul.f32 0.2, %v606_v60  ;;  %v625_v5 = vmul.f32 0.2, %v593_v61  ;;  %v607_v6 = vadd.f32 %v1137_v23, %v568_v62  ;;  %v867_v11 = vpop.f32.mrb[12].mxu0 }
 0x106   : > { %v672_v7 = vmax.f32 %v608_v54, %v640_v63  ;;  %v654_v8 = vmax.f32 %v590_v55, %v622_v0  ;;  %v641_v9 = vmul.f32 0.2, %v609_v1  ;;  %688 = vst [vmem:[%s1157_s14 + $0x50] sm:$0xff] %v656_v3  ;;  %v557_v15 = vmul.f32 %v867_v11, %v1131_v21  ;;  %v883_v16 = vpop.f32.mrb[12].mxu1  ;;  %v457_v17 = vpop.f32.mrb[13].mxu0 }
 0x107   : > { %v623_v10 = vmul.f32 0.2, %v591_v2  ;;  %v670_v12 = vmax.f32 %v606_v60, %v638_v4  ;;  %v657_v13 = vmax.f32 %v593_v61, %v625_v5  ;;  %v639_v14 = vmul.f32 0.2, %v607_v6  ;;  %v521_v24 = vpop.f32.mrb[13].mxu1  ;;  %v868_v25 = vpop.f32.mrb[14].mxu0 }
 0x108   : > { %704 = vst [vmem:[%s1157_s14 + $0xd0] sm:$0xff] %v672_v7  ;;  %686 = vst [vmem:[%s1157_s14 + $0x40] sm:$0xff] %v654_v8  ;;  %v673_v18 = vmax.f32 %v609_v1, %v641_v9  ;;  %v573_v20 = vmul.f32 %v883_v16, %v1131_v21  ;;  %v555_v22 = vmul.f32 %v1131_v21, %v457_v17  ;;  %v884_v30 = vpop.f32.mrb[14].mxu1  ;;  %v460_v31 = vpop.f32.mrb[15].mxu0 }
 0x109   : > { %v655_v19 = vmax.f32 %v591_v2, %v623_v10  ;;  %702 = vst [vmem:[%s1157_s14 + $0xc0] sm:$0xff] %v670_v12  ;;  %689 = vst [vmem:[%s1157_s14 + $0x58] sm:$0xff] %v657_v13  ;;  %v671_v26 = vmax.f32 %v607_v6, %v639_v14  ;;  %v596_v27 = vadd.f32 %v1137_v23, %v557_v15  ;;  %v524_v36 = vpop.f32.mrb[15].mxu1 }
 0x10a   : > { %v571_v28 = vmul.f32 %v1131_v21, %v521_v24  ;;  %v558_v29 = vmul.f32 %v868_v25, %v1131_v21  ;;  %705 = vst [vmem:[%s1157_s14 + $0xd8] sm:$0xff] %v673_v18  ;;  %v612_v32 = vadd.f32 %v1137_v23, %v573_v20  ;;  %v594_v33 = vadd.f32 %v1137_v23, %v555_v22 }
 0x10b   : > { %687 = vst [vmem:[%s1157_s14 + $0x48] sm:$0xff] %v655_v19  ;;  %v574_v34 = vmul.f32 %v884_v30, %v1131_v21  ;;  %v556_v35 = vmul.f32 %v1131_v21, %v460_v31  ;;  %703 = vst [vmem:[%s1157_s14 + $0xc8] sm:$0xff] %v671_v26  ;;  %v628_v37 = vmul.f32 0.2, %v596_v27  ;;  %v572_v40 = vmul.f32 %v1131_v21, %v524_v36 }
 0x10c   : > { %v610_v38 = vadd.f32 %v1137_v23, %v571_v28  ;;  %v597_v39 = vadd.f32 %v1137_v23, %v558_v29  ;;  %v644_v41 = vmul.f32 0.2, %v612_v32  ;;  %v626_v42 = vmul.f32 0.2, %v594_v33 }
 0x10d   : > { %v613_v43 = vadd.f32 %v1137_v23, %v574_v34  ;;  %v595_v44 = vadd.f32 %v1137_v23, %v556_v35  ;;  %v660_v45 = vmax.f32 %v596_v27, %v628_v37  ;;  %v611_v48 = vadd.f32 %v1137_v23, %v572_v40 }
 0x10e   : > { %v642_v46 = vmul.f32 0.2, %v610_v38  ;;  %v629_v47 = vmul.f32 0.2, %v597_v39  ;;  %v676_v49 = vmax.f32 %v612_v32, %v644_v41  ;;  %v658_v50 = vmax.f32 %v594_v33, %v626_v42 }
 0x10f   : > { %v645_v21 = vmul.f32 0.2, %v613_v43  ;;  %v627_v51 = vmul.f32 0.2, %v595_v44  ;;  %692 = vst [vmem:[%s1157_s14 + $0x70] sm:$0xff] %v660_v45 }
 0x110   : > { %v674_v52 = vmax.f32 %v610_v38, %v642_v46  ;;  %v661_v53 = vmax.f32 %v597_v39, %v629_v47  ;;  %v643_v54 = vmul.f32 0.2, %v611_v48  ;;  %708 = vst [vmem:[%s1157_s14 + $0xf0] sm:$0xff] %v676_v49  ;;  %690 = vst [vmem:[%s1157_s14 + $0x60] sm:$0xff] %v658_v50 }
 0x111   : > { %v677_v23 = vmax.f32 %v613_v43, %v645_v21  ;;  %v659_v55 = vmax.f32 %v595_v44, %v627_v51 }
 0x112   : > { %706 = vst [vmem:[%s1157_s14 + $0xe0] sm:$0xff] %v674_v52  ;;  %693 = vst [vmem:[%s1157_s14 + $0x78] sm:$0xff] %v661_v53  ;;  %v675_v56 = vmax.f32 %v611_v48, %v643_v54 }
 0x113   : > { %709 = vst [vmem:[%s1157_s14 + $0xf8] sm:$0xff] %v677_v23  ;;  %691 = vst [vmem:[%s1157_s14 + $0x68] sm:$0xff] %v659_v55 }
 0x114   : > { %707 = vst [vmem:[%s1157_s14 + $0xe8] sm:$0xff] %v675_v56 }
 0x115   : > { %959 = shalt.err (!%p956_p3)
}
 0x116   : > { %s960_s7 = scalar_lea.hbm %s1239_s27, 4096  ;;  %s964_s10 = scalar_lea.hbm %s1295_s4, 8192 }
 0x117   : > { %p961_p4 = scmp.ne.s32.totalorder %s1239_s27, %s960_s7  ;;  %p965_p9 = scmp.lt.u32.totalorder %s1239_s27, %s1295_s4 }
 0x118   : > { %p966_p10 = scmp.lt.u32.totalorder %s964_s10, %s960_s7  ;;  %p968_p12 = scmp.lt.u32.totalorder %s960_s7, %s1239_s27 }
 0x119   : > { %p962_p7 = pnand %p961_p4, %p1077_p5 }
 0x11a   : > { %p967_p11 = por %p966_p10, %p965_p9 }
 0x11b   : > { %p963_p8 = pneg %p962_p7 }
 0x11c   : > { %p969_p13 = por %p968_p12, %p967_p11 }
 0x11e   : > { %p970_p0 = pnand %p969_p13, %p963_p8 }
 0x120   : > { %973 = shalt.err (!%p970_p0)
}
 0x121   : > { %s1012_s13 = smov 128   ;;  %s1013_s14 = smov 8  }
 0x122   : > { %887 = dma.vmem_to_hbm [thread:$0]  (%p1077_p5), %s1241_s22, 4096, %s1239_s27, %s1250_s28, %s1012_s13, %s1012_s13, %s1013_s14  }
 0x123 PF: > { %p893_p1 = scmp.ge.s32.totalorder %s1008_s18, 2  ;;  %s739_s20 = sand.u32 1, %s996_s15  }
 0x124   : > { %s740_s19 = scalar_lea.sflag [#allocation3], %s739_s20 }
 0x125   : > { %p890_p2 = pnand %p893_p1, %p1081_p6 }
 0x127   : > { %991 = dma.done.wait (!%p890_p2), %s740_s19, 4096  }
 0x128   : > { %993 = vsyncadd (!%p890_p2), %s740_s19, 4294963200  ;;  %p14_p3 = scmp.ge.s32.totalorder %s1064_s21, 4   ;;  %s1298_s15 = smov %s1000_s16 }
 0x129   : > { %s1299_s16 = smov %s1004_s17  ;;  %s1300_s17 = smov %s1075_s24 }
 0x12a   : > { %s1301_s18 = smov %s1064_s21  ;;  %16 = sbr.rel (!%p14_p3) target bundleno = 3 (0x3), region = 71 }
 0x131   :  { %745 = vsyncpa [#allocation3], 1 }
 0x132   :  { %747 = vsyncpa [#allocation3 + $0x1], 1 }

</bundles_post_ra>
